<compile_context>
chip_gen: v6e
topology: v6e:2x2x1
jax: 0.10.0
libtpu: 0.0.40
codegen_flags: <defaults>
</compile_context>

<pallas_src>
import jax
import jax.numpy as jnp
from jax.experimental import pallas as pl
from jax.experimental.pallas import tpu as pltpu


# ---------------------------------------------------------------------------
# Kernel
# ---------------------------------------------------------------------------
def _make_kernel(store_acts):
    def kernel(x_ref, wenc_ref, benc_ref, wdec_ref, bdec_ref, *refs):
        if store_acts:
            out_ref, acts_ref, acc_ref = refs
        else:
            out_ref, acc_ref = refs

        h = pl.program_id(1)

        @pl.when(h == 0)
        def _():
            acc_ref[...] = jnp.zeros_like(acc_ref)

        # encode tile: (TM, 2*d_in) @ (2*d_in, TH) -> (TM, TH), f32 accumulation.
        x_enc = jnp.dot(x_ref[...], wenc_ref[...],
                        preferred_element_type=jnp.float32)
        acts_f32 = jnp.maximum(x_enc + benc_ref[...], 0.0)   # bias + ReLU in f32
        # Single cast to the compute dtype; the stored acts are bit-identical
        # to what the decode matmul consumes.
        acts_lo = acts_f32.astype(wdec_ref.dtype)
        if store_acts:
            acts_ref[...] = acts_lo.astype(acts_ref.dtype)

        # decode partial: (TM, TH) @ (TH, 2*d_in) into the resident f32 acc.
        acc_ref[...] += jnp.dot(acts_lo, wdec_ref[...],
                                preferred_element_type=jnp.float32)

        @pl.when(h == pl.num_programs(1) - 1)
        def _():
            out_ref[...] = (acc_ref[...] + bdec_ref[...]).astype(out_ref.dtype)

    return kernel


# ---------------------------------------------------------------------------
# Tiling / VMEM budgeting
# ---------------------------------------------------------------------------
def _vmem_capacity_bytes():
    """Physical per-core VMEM; conservative 64 MiB fallback (valid everywhere)."""
    try:
        info = pltpu.get_tpu_info()
        for attr in ("vmem_capacity_bytes", "vmem_bytes", "vmem_size_bytes"):
            cap = getattr(info, attr, None)
            if cap:
                return int(cap)
    except Exception:
        pass
    return 64 * 2**20


def _vmem_bytes(tm, th, two_d, itemsize, store_acts):
    """Accurate per-step VMEM footprint (double-buffered tiles + scratch)."""
    dbl = 2  # BlockSpec double-buffering
    total = 0
    total += dbl * tm * two_d * itemsize          # x tile
    total += dbl * two_d * th * itemsize          # W_enc column slab
    total += dbl * th * two_d * itemsize          # W_dec row slab
    total += dbl * 8 * th * 4                     # b_enc (1, th) padded to 8 sublanes
    total += dbl * 8 * two_d * 4                  # b_dec (1, two_d) padded
    total += dbl * tm * two_d * itemsize          # recon output block
    if store_acts:
        total += dbl * tm * th * itemsize         # acts output block
    total += tm * two_d * 4                       # resident f32 accumulator scratch
    return total


def _candidates(dim, base):
    cs = {c for c in base if c <= dim and dim % c == 0}
    cs.add(dim)  # full extent is always legal w.r.t. the (8,128) rule
    return sorted(cs, reverse=True)


def _select_tiles(B, d_hidden, two_d, itemsize, store_acts, vmem_budget,
                  block_m=None, block_h=None, min_batch_tiles=1):
    # tm is the primary roofline knob (weights re-streamed B/tm times), so it
    # is maximized first; th is then the largest slab that still fits VMEM
    # (large th also keeps the strided W_enc column-slab DMA rows wide).
    tm_cands = [block_m] if block_m is not None else _candidates(
        B, (1024, 512, 256, 128, 64, 32, 16, 8))
    th_cands = [block_h] if block_h is not None else _candidates(
        d_hidden, (2048, 1024, 512, 256, 128))

    if min_batch_tiles > 1 and block_m is None:
        filt = [t for t in tm_cands if B // t >= min_batch_tiles]
        if filt:
            tm_cands = filt

    for tm in tm_cands:
        for th in th_cands:
            if _vmem_bytes(tm, th, two_d, itemsize, store_acts) <= vmem_budget:
                return tm, th
    # Nothing fits the budget: fall back to the smallest legal tiles.
    return tm_cands[-1], th_cands[-1]


# ---------------------------------------------------------------------------
# Forward wrapper
# ---------------------------------------------------------------------------
def crosscoder_forward(x, W_enc, b_enc, W_dec, b_dec, *,
                       block_m=None, block_h=None,
                       weight_dtype=jnp.bfloat16,
                       return_acts=True,
                       min_batch_tiles=1):
    """x: (B, 2, d_in). Returns (recon (B,2,d_in), acts (B,H)) or recon only.

    weight_dtype: compute dtype for x / weights (default bf16; accumulation is
      always f32 inside the kernel). Pass jnp.float32 for a full-precision path.
    min_batch_tiles: set to 2 on v7x so the parallel batch-tile axis can split
      across its two TensorCores.
    """
    B, n_models, d_in = x.shape
    d_hidden = W_enc.shape[-1]
    assert n_models == 2
    two_d = n_models * d_in

    if weight_dtype is not None:
        x = x.astype(weight_dtype)
        W_enc = W_enc.astype(weight_dtype)
        W_dec = W_dec.astype(weight_dtype)
    compute_dtype = x.dtype
    itemsize = jnp.dtype(compute_dtype).itemsize

    x_flat = x.reshape(B, two_d)
    wenc_flat = W_enc.reshape(two_d, d_hidden)
    wdec_flat = W_dec.reshape(d_hidden, two_d)
    benc2 = b_enc.reshape(1, d_hidden).astype(jnp.float32)   # lane-dense f32 bias
    bdec2 = b_dec.reshape(1, two_d).astype(jnp.float32)

    # Generation-aware VMEM budget (~75% of physical, leaving headroom for
    # compiler-internal scratch): ~96 MiB on v5e/v6e, ~48 MiB on v7x.
    vmem_cap = _vmem_capacity_bytes()
    vmem_budget = int(vmem_cap * 0.75)

    tm, th = _select_tiles(B, d_hidden, two_d, itemsize, return_acts,
                           vmem_budget, block_m=block_m, block_h=block_h,
                           min_batch_tiles=min_batch_tiles)
    assert B % tm == 0, f"block_m={tm} must divide batch={B}"
    assert d_hidden % th == 0, f"block_h={th} must divide d_hidden={d_hidden}"
    grid = (B // tm, d_hidden // th)

    needed = _vmem_bytes(tm, th, two_d, itemsize, return_acts)
    vmem_limit = int(min(vmem_cap - (8 << 20), max(32 << 20, needed + (8 << 20))))
    vmem_limit = max(vmem_limit, needed)

    # Cost estimate: weights are re-streamed once per batch tile.
    n_batch_tiles = B // tm
    flops = 4 * B * two_d * d_hidden
    bytes_accessed = (
        x_flat.size * itemsize
        + (wenc_flat.size + wdec_flat.size) * itemsize * n_batch_tiles
        + (benc2.size + bdec2.size) * 4
        + B * two_d * itemsize
        + (B * d_hidden * itemsize if return_acts else 0))

    out_shapes = [jax.ShapeDtypeStruct((B, two_d), compute_dtype)]
    out_specs = [pl.BlockSpec((tm, two_d), lambda i, h: (i, 0))]  # resident over h
    if return_acts:
        out_shapes.append(jax.ShapeDtypeStruct((B, d_hidden), compute_dtype))
        out_specs.append(pl.BlockSpec((tm, th), lambda i, h: (i, h)))

    results = pl.pallas_call(
        _make_kernel(return_acts),
        out_shape=tuple(out_shapes),
        grid=grid,
        in_specs=[
            pl.BlockSpec((tm, two_d), lambda i, h: (i, 0)),   # x tile
            pl.BlockSpec((two_d, th), lambda i, h: (0, h)),   # W_enc column slab
            pl.BlockSpec((1, th),     lambda i, h: (0, h)),   # b_enc slab
            pl.BlockSpec((th, two_d), lambda i, h: (h, 0)),   # W_dec row slab
            pl.BlockSpec((1, two_d),  lambda i, h: (0, 0)),   # b_dec
        ],
        out_specs=tuple(out_specs),
        scratch_shapes=[pltpu.VMEM((tm, two_d), jnp.float32)],
        compiler_params=pltpu.CompilerParams(
            dimension_semantics=("parallel", "arbitrary"),
            vmem_limit_bytes=vmem_limit,
        ),
        cost_estimate=pl.CostEstimate(
            flops=flops, transcendentals=0, bytes_accessed=bytes_accessed),
    )(x_flat, wenc_flat, benc2, wdec_flat, bdec2)

    if return_acts:
        out_flat, acts = results
        return out_flat.reshape(B, n_models, d_in), acts
    (out_flat,) = results
    return out_flat.reshape(B, n_models, d_in)


# ---------------------------------------------------------------------------
# Reference / init (mirrors CrossCoder.__init__ and forward)
# ---------------------------------------------------------------------------
def init_params(key, d_in, d_hidden, dec_init_norm=0.08, dtype=jnp.float32):
    W_dec = jax.random.normal(key, (d_hidden, 2, d_in), dtype=jnp.float32)
    norms = jnp.linalg.norm(W_dec, axis=-1, keepdims=True)
    W_dec = W_dec / norms * dec_init_norm
    W_enc = jnp.transpose(W_dec, (1, 2, 0))   # 'h n d -> n d h'
    b_enc = jnp.zeros((d_hidden,), dtype)
    b_dec = jnp.zeros((2, d_in), dtype)
    return (W_enc.astype(dtype), b_enc, W_dec.astype(dtype), b_dec)


def reference_forward(x, W_enc, b_enc, W_dec, b_dec):
    x_enc = jnp.einsum('bnd,ndh->bh', x, W_enc)
    acts = jnp.maximum(x_enc + b_enc, 0.0)
    recon = jnp.einsum('bh,hnd->bnd', acts, W_dec) + b_dec
    return recon, acts


if __name__ == "__main__":
    # Small multi-tile shapes: batch=16, d_in=64 (2*d_in=128), dict_size=256.
    B, d_in, d_hidden = 16, 64, 256
    key = jax.random.PRNGKey(0)
    kx, kp = jax.random.split(key)

    W_enc, b_enc, W_dec, b_dec = init_params(kp, d_in, d_hidden)
    x = jax.random.normal(kx, (B, 2, d_in), dtype=jnp.float32)

    recon_ref, acts_ref_val = reference_forward(x, W_enc, b_enc, W_dec, b_dec)

    # f32 path with explicit small tiles (grid = (2, 2)) exercising the
    # resident-accumulator init/finalize; tight tolerance.
    recon, acts = crosscoder_forward(x, W_enc, b_enc, W_dec, b_dec,
                                     block_m=8, block_h=128,
                                     weight_dtype=jnp.float32)
    recon = jax.block_until_ready(recon)
    acts = jax.block_until_ready(acts)
    assert jnp.allclose(recon, recon_ref, atol=1e-4, rtol=1e-4)
    assert jnp.allclose(acts, acts_ref_val, atol=1e-4, rtol=1e-4)

    # Default production path: bf16 compute, auto tile selection; loose check.
    recon_bf, acts_bf = crosscoder_forward(x, W_enc, b_enc, W_dec, b_dec)
    recon_bf = jax.block_until_ready(recon_bf)
    assert jnp.allclose(recon_bf.astype(jnp.float32), recon_ref,
                        atol=3e-2, rtol=3e-2)

    # Recon-only path (drops the (B, H) acts HBM stream entirely).
    recon_only = crosscoder_forward(x, W_enc, b_enc, W_dec, b_dec,
                                    return_acts=False)
    recon_only = jax.block_until_ready(recon_only)
    assert jnp.allclose(recon_only.astype(jnp.float32), recon_ref,
                        atol=3e-2, rtol=3e-2)

    print("KERNEL_OK")
</pallas_src>

<mosaic_0001>
module attributes {stable_mosaic.version = 11 : i64} {
  func.func @kernel(%arg0: i32, %arg1: i32, %arg2: memref<8x128xf32, #tpu.memory_space<vmem>>, %arg3: memref<128x128xf32, #tpu.memory_space<vmem>>, %arg4: memref<1x128xf32, #tpu.memory_space<vmem>>, %arg5: memref<128x128xf32, #tpu.memory_space<vmem>>, %arg6: memref<1x128xf32, #tpu.memory_space<vmem>>, %arg7: memref<8x128xf32, #tpu.memory_space<vmem>>, %arg8: memref<8x128xf32, #tpu.memory_space<vmem>>, %arg9: memref<8x128xf32, #tpu.memory_space<vmem>>) attributes {dimension_semantics = [#tpu.dimension_semantics<parallel>, #tpu.dimension_semantics<arbitrary>], iteration_bounds = array<i64: 2, 2>, scalar_prefetch = 0 : i64, scratch_operands = 1 : i64, tpu.core_type = #tpu.core_type<tc>, window_params = [{transform_indices = @transform_0, window_bounds = array<i64: 8, 128>}, {transform_indices = @transform_1, window_bounds = array<i64: 128, 128>}, {transform_indices = @transform_2, window_bounds = array<i64: 1, 128>}, {transform_indices = @transform_3, window_bounds = array<i64: 128, 128>}, {pipeline_mode = #tpu.pipeline_mode<synchronous>, transform_indices = @transform_4, window_bounds = array<i64: 1, 128>}, {transform_indices = @transform_5, window_bounds = array<i64: 8, 128>}, {transform_indices = @transform_6, window_bounds = array<i64: 8, 128>}]} {
    %c0_i32 = arith.constant 0 : i32
    %0 = arith.cmpi eq, %arg1, %c0_i32 : i32
    %1 = arith.extui %0 : i1 to i32
    %c0_i32_0 = arith.constant 0 : i32
    %2 = arith.cmpi ne, %1, %c0_i32_0 : i32
    scf.if %2 {
      %cst_17 = arith.constant 0.000000e+00 : f32
      %20 = vector.broadcast %cst_17 : f32 to vector<8x128xf32>
      %c0_18 = arith.constant 0 : index
      %c0_19 = arith.constant 0 : index
      %21 = vector.load %arg9[%c0_18, %c0_19] : memref<8x128xf32, #tpu.memory_space<vmem>>, vector<8x128xf32>
      tpu.vector_store %arg9[%c0_18, %c0_19], %20 {strides = array<i32>} : memref<8x128xf32, #tpu.memory_space<vmem>>, vector<8x128xf32>,
    } else {
    }
    %c0 = arith.constant 0 : index
    %c0_1 = arith.constant 0 : index
    %3 = vector.load %arg2[%c0, %c0_1] : memref<8x128xf32, #tpu.memory_space<vmem>>, vector<8x128xf32>
    %c0_2 = arith.constant 0 : index
    %c0_3 = arith.constant 0 : index
    %4 = vector.load %arg3[%c0_2, %c0_3] : memref<128x128xf32, #tpu.memory_space<vmem>>, vector<128x128xf32>
    %cst = arith.constant dense<0.000000e+00> : vector<8x128xf32>
    %5 = tpu.matmul %3, %4, %cst {dimension_numbers = #tpu.dot_dimension_numbers<[1], [0], [0], [1], [0, 0, 1, 1], [], []>} : vector<8x128xf32>, vector<128x128xf32>, vector<8x128xf32> -> vector<8x128xf32>
    %c0_4 = arith.constant 0 : index
    %c0_5 = arith.constant 0 : index
    %6 = vector.load %arg4[%c0_4, %c0_5] : memref<1x128xf32, #tpu.memory_space<vmem>>, vector<1x128xf32>
    %7 = vector.broadcast %6 : vector<1x128xf32> to vector<8x128xf32>
    %8 = arith.addf %5, %7 : vector<8x128xf32>
    %cst_6 = arith.constant 0.000000e+00 : f32
    %9 = vector.broadcast %cst_6 : f32 to vector<8x128xf32>
    %10 = arith.maximumf %8, %9 : vector<8x128xf32>
    %c0_7 = arith.constant 0 : index
    %c0_8 = arith.constant 0 : index
    %11 = vector.load %arg8[%c0_7, %c0_8] : memref<8x128xf32, #tpu.memory_space<vmem>>, vector<8x128xf32>
    tpu.vector_store %arg8[%c0_7, %c0_8], %10 {strides = array<i32>} : memref<8x128xf32, #tpu.memory_space<vmem>>, vector<8x128xf32>,
    %c0_9 = arith.constant 0 : index
    %c0_10 = arith.constant 0 : index
    %12 = vector.load %arg9[%c0_9, %c0_10] : memref<8x128xf32, #tpu.memory_space<vmem>>, vector<8x128xf32>
    %c0_11 = arith.constant 0 : index
    %c0_12 = arith.constant 0 : index
    %13 = vector.load %arg5[%c0_11, %c0_12] : memref<128x128xf32, #tpu.memory_space<vmem>>, vector<128x128xf32>
    %cst_13 = arith.constant dense<0.000000e+00> : vector<8x128xf32>
    %14 = tpu.matmul %10, %13, %cst_13 {dimension_numbers = #tpu.dot_dimension_numbers<[1], [0], [0], [1], [0, 0, 1, 1], [], []>} : vector<8x128xf32>, vector<128x128xf32>, vector<8x128xf32> -> vector<8x128xf32>
    %15 = arith.addf %12, %14 : vector<8x128xf32>
    %c0_14 = arith.constant 0 : index
    %c0_15 = arith.constant 0 : index
    %16 = vector.load %arg9[%c0_14, %c0_15] : memref<8x128xf32, #tpu.memory_space<vmem>>, vector<8x128xf32>
    tpu.vector_store %arg9[%c0_14, %c0_15], %15 {strides = array<i32>} : memref<8x128xf32, #tpu.memory_space<vmem>>, vector<8x128xf32>,
    %c1_i32 = arith.constant 1 : i32
    %17 = arith.cmpi eq, %arg1, %c1_i32 : i32
    %18 = arith.extui %17 : i1 to i32
    %c0_i32_16 = arith.constant 0 : i32
    %19 = arith.cmpi ne, %18, %c0_i32_16 : i32
    scf.if %19 {
      %c0_17 = arith.constant 0 : index
      %c0_18 = arith.constant 0 : index
      %20 = vector.load %arg9[%c0_17, %c0_18] : memref<8x128xf32, #tpu.memory_space<vmem>>, vector<8x128xf32>
      %c0_19 = arith.constant 0 : index
      %c0_20 = arith.constant 0 : index
      %21 = vector.load %arg6[%c0_19, %c0_20] : memref<1x128xf32, #tpu.memory_space<vmem>>, vector<1x128xf32>
      %22 = vector.broadcast %21 : vector<1x128xf32> to vector<8x128xf32>
      %23 = arith.addf %20, %22 : vector<8x128xf32>
      %c0_21 = arith.constant 0 : index
      %c0_22 = arith.constant 0 : index
      %24 = vector.load %arg7[%c0_21, %c0_22] : memref<8x128xf32, #tpu.memory_space<vmem>>, vector<8x128xf32>
      tpu.vector_store %arg7[%c0_21, %c0_22], %23 {strides = array<i32>} : memref<8x128xf32, #tpu.memory_space<vmem>>, vector<8x128xf32>,
    } else {
    }
    return
  }
  func.func @transform_0(%arg0: i32, %arg1: i32) -> (i32, i32) {
    %c0_i32 = arith.constant 0 : i32
    %c0_i32_0 = arith.constant 0 : i32
    return %arg0, %c0_i32 : i32, i32
  }
  func.func @transform_1(%arg0: i32, %arg1: i32) -> (i32, i32) {
    %c0_i32 = arith.constant 0 : i32
    %c0_i32_0 = arith.constant 0 : i32
    return %c0_i32, %arg1 : i32, i32
  }
  func.func @transform_2(%arg0: i32, %arg1: i32) -> (i32, i32) {
    %c0_i32 = arith.constant 0 : i32
    %c0_i32_0 = arith.constant 0 : i32
    return %c0_i32, %arg1 : i32, i32
  }
  func.func @transform_3(%arg0: i32, %arg1: i32) -> (i32, i32) {
    %c0_i32 = arith.constant 0 : i32
    %c0_i32_0 = arith.constant 0 : i32
    return %arg1, %c0_i32 : i32, i32
  }
  func.func @transform_4(%arg0: i32, %arg1: i32) -> (i32, i32) {
    %c0_i32 = arith.constant 0 : i32
    %c0_i32_0 = arith.constant 0 : i32
    %c0_i32_1 = arith.constant 0 : i32
    return %c0_i32, %c0_i32_0 : i32, i32
  }
  func.func @transform_5(%arg0: i32, %arg1: i32) -> (i32, i32) {
    %c0_i32 = arith.constant 0 : i32
    %c0_i32_0 = arith.constant 0 : i32
    return %arg0, %c0_i32 : i32, i32
  }
  func.func @transform_6(%arg0: i32, %arg1: i32) -> (i32, i32) {
    %c0_i32 = arith.constant 0 : i32
    return %arg0, %arg1 : i32, i32
  }
}

</mosaic_0001>

<bundles_post_ra>
// kernel: tpu_custom_call.1
= control target key start
LH: loop header
LB: loop body
LE: loop exit
PB: predicated region body
PF: predicated region fallthrough
CT: control target
= control target key end

     0   :  { %s1818_s0 = inlined_call_operand.hbm [shape: f32[16,128], index: 0, kind: input, shape index: {}]   ;;  %s1819_s1 = inlined_call_operand.hbm [shape: f32[128,256], index: 1, kind: input, shape index: {}]   ;;  %s1820_s2 = inlined_call_operand.vmem [shape: f32[1,256], index: 2, kind: input, shape index: {}]   ;;  %s1821_s3 = inlined_call_operand.hbm [shape: f32[256,128], index: 3, kind: input, shape index: {}]   ;;  %s1822_s4 = inlined_call_operand.vmem [shape: f32[1,128], index: 4, kind: input, shape index: {}]   ;;  %s1823_s5 = inlined_call_operand.hbm [shape: f32[16,128], index: 5, kind: output, shape index: {0}]   ;;  %s1824_s6 = inlined_call_operand.hbm [shape: f32[16,256], index: 6, kind: output, shape index: {1}]  }
   0x1   :  { %1842 = sst [smem:[#allocation29_spill]] %s1818_s0 }
   0x2   :  { %1843 = sst [smem:[#allocation30_spill]] %s1819_s1 }
   0x3   :  { %1844 = sst [smem:[#allocation31_spill]] %s1820_s2 }
   0x4   :  { %1845 = sst [smem:[#allocation32_spill]] %s1822_s4 }
   0x5   :  { %1846 = sst [smem:[#allocation33_spill]] %s1823_s5 }
   0x6   :  { %1847 = sst [smem:[#allocation34_spill]] %s1824_s6 }
   0x7   :  { %12 = vsyncpa [#allocation4], 0 }
   0x8   :  { %14 = vsyncpa [#allocation4 + $0x1], 0 }
   0x9   :  { %15 = vsyncpa [#allocation7], 0 }
   0xa   :  { %17 = vsyncpa [#allocation7 + $0x1], 0 }
   0xb   :  { %18 = vsyncpa [#allocation5], 0 }
   0xc   :  { %20 = vsyncpa [#allocation5 + $0x1], 0 }
   0xd   :  { %21 = vsyncpa [#allocation11], 0 }
   0xe   :  { %23 = vsyncpa [#allocation11 + $0x1], 0  ;;  %s1378_s21 = smov 0   ;;  %s1380_s22 = smov 0  }
   0xf   :  { %s1382_s23 = smov 0   ;;  %s1384_s24 = smov 0  }
  0x10   :  { %s1386_s25 = smov 0   ;;  %s1388_s26 = smov 0  }
  0x11   :  { %s1390_s27 = smov 0   ;;  %s1392_s28 = smov 0  }
  0x12   :  { %s1394_s29 = smov 0   ;;  %s1396_s30 = smov 0  }
  0x13   :  { %s1398_s7 = smov 0   ;;  %s1400_s8 = smov 0  }
  0x14   :  { %s1402_s9 = smov 0   ;;  %s1404_s10 = smov 0  }
  0x15 LB: > { %1848 = sst [smem:[#allocation16_spill]] %s1278_s21  ;;  %p56_p0 = scmp.eq.s32.totalorder %s1330_s10, 0  ;;  %s1330_s10 = sphi %s1404_s10, %s29_s10   ;;  %s1326_s9 = sphi %s1402_s9, %s1901_s9   ;;  %s1322_s8 = sphi %s1400_s8, %s1908_s8   ;;  %s1318_s7 = sphi %s1398_s7, %s1899_s7   ;;  %s1314_s30 = sphi %s1396_s30, %s1907_s30   ;;  %s1310_s29 = sphi %s1394_s29, %s1906_s29   ;;  %s1306_s28 = sphi %s1392_s28, %s1905_s28   ;;  %s1302_s27 = sphi %s1390_s27, %s1904_s27   ;;  %s1298_s26 = sphi %s1388_s26, %s1897_s26   ;;  %s1294_s25 = sphi %s1386_s25, %s1896_s25   ;;  %s1290_s24 = sphi %s1384_s24, %s1895_s24   ;;  %s1286_s23 = sphi %s1382_s23, %s1894_s23   ;;  %s1282_s22 = sphi %s1380_s22, %s1903_s22   ;;  %s1278_s21 = sphi %s1378_s21, %s1902_s21  }
  0x16   : > { %1849 = sst [smem:[#allocation17_spill]] %s1286_s23  ;;  %p81_p1 = scmp.ne.s32.totalorder %s1298_s26, %s1294_s25 }
  0x17   : > { %1850 = sst [smem:[#allocation18_spill]] %s1294_s25  ;;  %p1833_p2 = scmp.lt.s32.totalorder %s1330_s10, 4 }
  0x18   : > { %1851 = sst [smem:[#allocation19_spill]] %s1298_s26  ;;  %p83_p3 = por %p81_p1, %p56_p0 }
  0x19   : > { %1852 = sst [smem:[#allocation20_spill]] %s1314_s30  ;;  %s259_s11 = sand.u32 1, %s1330_s10  }
  0x1a   : > { %1853 = sst [smem:[#allocation21_spill]] %s1318_s7  ;;  %s261_s12 = sand.u32 1, %s1298_s26  }
  0x1b   : > { %1854 = sst [smem:[#allocation22_spill]] %s1326_s9  ;;  %s1456_s13 = sshll.u32 %s261_s12, 7 }
  0x1c   : > { %s795_s14 = sshll.u32 %s1322_s8, 7  ;;  %s1855_s1 = sld [smem:[#allocation30_spill]] }
  0x1d   : > { %s263_s18 = scalar_lea.vmem [#allocation6], %s1456_s13  ;;  %p1465_p4 = pnand %p1833_p2, %p83_p3 }
  0x1e   : > { %s269_s19 = sshll.u32 %s263_s18, 4  ;;  %p799_p5 = scmp.ge.s32.totalorder %s1330_s10, 1  ;;  %s270_s19 = int_to_ptr.vmem [resolvable:$true] %s269_s19 }
  0x1f   : > { %s1470_s6 = scalar_lea.sflag [#allocation7], %s259_s11  ;;  %p1830_p6 = pneg %p1465_p4 }
  0x20   : > { %s1081_s12 = scalar_lea.vmem %s270_s19, 2048 }
  0x21   : > { %p1082_p7 = scmp.ne.s32.totalorder %s270_s19, %s1081_s12 }
  0x22   : > { %s268_s17 = scalar_lea.hbm %s1855_s1, %s795_s14  ;;  %s1332_s14 = smov [#allocation6]  }
  0x23   : > { %p1084_p8 = pnand %p1082_p7, %p1830_p6  ;;  %s1086_s15 = sshll.u32 %s1332_s14, 4  ;;  %s1087_s15 = int_to_ptr.vmem [resolvable:$false] %s1086_s15 }
  0x24   : > { %s1088_s16 = scalar_lea.vmem %s1087_s15, 4096  ;;  %p1089_p10 = scmp.lt.s32.totalorder %s270_s19, %s1087_s15 }
  0x25   : > { %p1085_p9 = pneg %p1084_p8  ;;  %p1090_p11 = scmp.lt.s32.totalorder %s1088_s16, %s1081_s12 }
  0x27   : > { %p1091_p12 = por %p1090_p11, %p1089_p10 }
  0x29   : > { %p1092_p13 = pnand %p1091_p12, %p1085_p9 }
  0x2b   : > { %1095 = shalt.err (!%p1092_p13)
}
  0x2c   : > { %s1333_s18 = smov 256   ;;  %s1827_s11 = smov 128  }
  0x2d   : > { %s1828_s12 = smov 8   ;;  %p304_p1 = scmp.lt.s32.totalorder %s1330_s10, 5 }
  0x2e   : > { %937 = dma.hbm_to_vmem [thread:$0]  (!%p1465_p4), %s268_s17, 2048, %s270_s19, %s1470_s6, %s1333_s18, %s1827_s11, %s1828_s12  }
  0x2f   : > { %p1485_p3 = pnand %p799_p5, %p304_p1  ;;  %s1490_s15 = sadd.s32 4294967295, %s1330_s10  }
  0x30   : > { %s789_s16 = sadd.s32 4294967294, %s1330_s10   ;;  %s38_s1 = sadd.s32 1, %s1322_s8 }
  0x31   : > { %s41_s5 = sadd.s32 1, %s1326_s9  ;;  %p39_p7 = scmp.ge.s32.totalorder %s38_s1, 2 }
  0x32   : > { %s48_s17 = sadd.s32 1, %s1310_s29  ;;  %p55_p8 = scmp.ne.s32.totalorder %s1310_s29, %s1306_s28 }
  0x33   : > { %p61_p9 = scmp.ne.s32.totalorder %s1306_s28, %s1302_s27  ;;  %s1910_s1 = smov (%p39_p7, %s38_s1), 0 }
  0x34   : > { %1858 = sst [smem:[#allocation23_spill]] %s1910_s1  ;;  %s1912_s5 = smov (!%p39_p7, %s41_s5), %s1326_s9 }
  0x35   : > { %p1508_p5 = por %p56_p0, %p55_p8  ;;  %p62_p10 = scmp.eq.s32.totalorder %s1490_s15, 0 }
  0x36   : > { %p43_p11 = scmp.ge.s32.totalorder %s1912_s5, 2  ;;  %s71_s18 = ssub.s32 %s1322_s8, %s1910_s1 }
  0x37   : > { %p1518_p12 = por %p62_p10, %p61_p9  ;;  %p72_p13 = scmp.eq.s32.totalorder %s71_s18, 0 }
  0x38   : > { %s1914_s5 = smov (%p43_p11, %s1912_s5), 0  ;;  %s74_s12 = sadd.s32 1, %s1298_s26 }
  0x39   : > { %1861 = sst [smem:[#allocation24_spill]] %s1914_s5  ;;  %p87_p0 = scmp.ne.s32.totalorder %s1294_s25, %s1290_s24 }
  0x3a   : > { %s45_s1 = ssub.s32 %s1326_s9, %s1914_s5  ;;  %p184_p1 = scmp.eq.s32.totalorder %s1490_s15, 3 }
  0x3b   : > { %p46_p7 = scmp.eq.s32.totalorder %s45_s1, 0  ;;  %p1530_p6 = por %p87_p0, %p62_p10 }
  0x3c   : > { %s1535_s4 = scalar_select %p72_p13, %s1298_s26, %s74_s12  }
  0x3d   : > { %s1538_s2 = scalar_select %p46_p7, %s1310_s29, %s48_s17  }
  0x3e   : > { %1863 = sst [smem:[#allocation25_spill]] %s1535_s4  ;;  %p1545_p11 = por %p184_p1, %p55_p8 }
  0x3f   : > { %1864 = sst [smem:[#allocation26_spill]] %s1538_s2  ;;  %p190_p2 = scmp.eq.s32.totalorder %s789_s16, 3 }
  0x40   : > { %s1865_s30 = scalar_select %p1545_p11, 1, 0 }
  0x41   : > { %s198_s24 = sor.u32 %s71_s18, %s45_s1  ;;  %s201_s5 = sadd.s32 1, %s1286_s23 }
  0x42   : > { %p1553_p10 = por %p190_p2, %p61_p9  ;;  %p199_p13 = scmp.eq.s32.totalorder %s198_s24, 0 }
  0x43   : > { %p211_p0 = scmp.ne.s32.totalorder %s1286_s23, %s1282_s22  ;;  %p217_p7 = scmp.ne.s32.totalorder %s1282_s22, %s1278_s21 }
  0x44   : > { %s1866_s25 = scalar_select %p1553_p10, 1, 0 }
  0x45   : > { %s1562_s12 = scalar_select %p199_p13, %s1286_s23, %s201_s5  }
  0x46   : > { %1867 = sst [smem:[#allocation27_spill]] %s1866_s25  ;;  %p1566_p8 = por %p211_p0, %p184_p1 }
  0x47   : > { %1868 = sst [smem:[#allocation28_spill]] %s1562_s12  ;;  %p1570_p11 = por %p217_p7, %p190_p2 }
  0x48   : > { %s241_s1 = sand.u32 1, %s1310_s29   ;;  %s793_s18 = sshll.u32 %s1326_s9, 7 }
  0x49   : > { %s1870_s16 = scalar_select %p1570_p11, 1, 0 }
  0x4a   : > { %s792_s2 = sshll.u32 %s241_s1, 3  ;;  %s1871_s0 = sld [smem:[#allocation29_spill]] }
  0x4b   : > { %s245_s25 = scalar_lea.vmem [#allocation3], %s792_s2  ;;  %p1872_p9 = scmp.lt.s32.totalorder %s1330_s10, 4 }
  0x4c   : > { %s252_s21 = sshll.u32 %s245_s25, 4  ;;  %s816_s12 = sshll.u32 %s1322_s8, 11  ;;  %s253_s21 = int_to_ptr.vmem [resolvable:$true] %s252_s21 }
  0x4d   : > { %p1583_p13 = pnand %p1872_p9, %p1508_p5  ;;  %s242_s23 = scalar_lea.sflag [#allocation4], %s241_s1 }
  0x4e   : > { %s1109_s9 = scalar_lea.vmem %s253_s21, 128  ;;  %s1336_s4 = smov [#allocation3]  }
  0x4f   : > { %p1098_p2 = pneg %p1583_p13  ;;  %p1110_p1 = scmp.ne.s32.totalorder %s253_s21, %s1109_s9 }
  0x50   : > { %s250_s24 = scalar_lea.hbm %s1871_s0, %s793_s18  ;;  %s1114_s26 = sshll.u32 %s1336_s4, 4  ;;  %s1115_s26 = int_to_ptr.vmem [resolvable:$false] %s1114_s26 }
  0x51   : > { %p1112_p0 = pnand %p1110_p1, %p1098_p2  ;;  %s1116_s2 = scalar_lea.vmem %s1115_s26, 256 }
  0x52   : > { %p1117_p11 = scmp.lt.s32.totalorder %s253_s21, %s1115_s26  ;;  %p1118_p10 = scmp.lt.s32.totalorder %s1116_s2, %s1109_s9 }
  0x53   : > { %p1113_p7 = pneg %p1112_p0 }
  0x54   : > { %p1119_p5 = por %p1118_p10, %p1117_p11 }
  0x56   : > { %p1120_p9 = pnand %p1119_p5, %p1113_p7 }
  0x58   : > { %1123 = shalt.err (!%p1120_p9)
}
  0x59   : > { %934 = dma.hbm_to_vmem [thread:$0]  (!%p1583_p13), %s250_s24, 128, %s253_s21, %s242_s23  }
  0x5a   : > { %s295_s1 = scalar_lea.hbm %s1821_s3, %s816_s12  ;;  %s289_s18 = scalar_lea.vmem [#allocation8], %s1456_s13 }
  0x5b   : > { %s296_s0 = sshll.u32 %s289_s18, 4  ;;  %p1874_p1 = pneg %p1465_p4  ;;  %s297_s0 = int_to_ptr.vmem [resolvable:$true] %s296_s0 }
  0x5c   : > { %s1137_s4 = scalar_lea.vmem %s297_s0, 2048  ;;  %s1337_s9 = smov [#allocation8]  }
  0x5d   : > { %p1138_p2 = scmp.ne.s32.totalorder %s297_s0, %s1137_s4  ;;  %s1142_s26 = sshll.u32 %s1337_s9, 4  ;;  %s1143_s26 = int_to_ptr.vmem [resolvable:$false] %s1142_s26 }
  0x5e   : > { %s1144_s5 = scalar_lea.vmem %s1143_s26, 4096  ;;  %p1145_p10 = scmp.lt.s32.totalorder %s297_s0, %s1143_s26 }
  0x5f   : > { %p1140_p0 = pnand %p1138_p2, %p1874_p1  ;;  %p1146_p7 = scmp.lt.s32.totalorder %s1144_s5, %s1137_s4 }
  0x61   : > { %p1141_p11 = pneg %p1140_p0  ;;  %p1147_p13 = por %p1146_p7, %p1145_p10 }
  0x63   : > { %p1148_p5 = pnand %p1147_p13, %p1141_p11 }
  0x65   : > { %1151 = shalt.err (!%p1148_p5)
}
  0x66   : > { %s1875_s21 = smov 8   ;;  %s1876_s23 = smov 128  }
  0x67   : > { %940 = dma.hbm_to_vmem [thread:$0]  (!%p1465_p4), %s295_s1, 2048, %s297_s0, %s1470_s6, %s1876_s23, %s1876_s23, %s1875_s21  }
  0x68   : > { %308 = sbr.rel (%p1485_p3) target bundleno = 624 (0x270), region = 40  ;;  %s1608_s13 = sand.u32 (!%p1485_p3), 1, %s1306_s28  }
  0x69   : > { %s800_s12 = sshll.u32 (!%p1485_p3), %s1608_s13, 3  ;;  %s311_s24 = scalar_lea.sflag (!%p1485_p3), [#allocation4], %s1608_s13 }
  0x6a   : > { %s1612_s2 = scalar_lea.vmem (!%p1485_p3), [#allocation3], %s800_s12 }
  0x6d   : > { %1261 = dma.done.wait (%p1518_p12), %s311_s24, 128  }
  0x6e   : > { %1263 = vsyncadd (%p1518_p12), %s311_s24, 4294967168  ;;  %s1877_s0 = sld [smem:[#allocation18_spill]]  ;;  %s319_s6 = sand.u32 1, %s1490_s15  }
  0x6f   : > { %s320_s25 = scalar_lea.sflag [#allocation7], %s319_s6 }
  0x74   : > { %s321_s20 = sand.u32 1, %s1877_s0  }
  0x75   : > { %s801_s14 = sshll.u32 %s321_s20, 7 }
  0x76   : > { %s1620_s19 = scalar_lea.vmem [#allocation6], %s801_s14 }
  0x77   : > { %1265 = dma.done.wait (%p1530_p6), %s320_s25, 4096  }
  0x78   : > { %1267 = vsyncadd (%p1530_p6), %s320_s25, 4294963200  ;;  %s1878_s1 = sld [smem:[#allocation20_spill]]  ;;  %s376_s11 = sand.u32 1, %s1282_s22  }
  0x79   : > { %s1630_s18 = sshll.u32 %s376_s11, 3  ;;  %s1879_s26 = sld [smem:[#allocation31_spill]] }
  0x7a   : > { %s1639_s21 = scalar_lea.vmem [#allocation8], %s801_s14  ;;  %s1641_s7 = scalar_lea.vmem [#allocation9], %s800_s12 }
  0x7b   : > { %s378_s23 = scalar_lea.vmem [#allocation10], %s1630_s18 }
  0x7e   : > { %p379_p4 = scmp.lt.s32.totalorder %s1878_s1, 1  ;;  %p805_p6 = scmp.ne.s32.totalorder %s1878_s1, 0 }
  0x80   : > { %s1633_s15 = scalar_select %p379_p4, %s1878_s1, 1 }
  0x81   : > { %386 = sbr.rel (%p805_p6) target bundleno = 136 (0x88), region = 56 }
  0x82   : > { %s381_s5 = scalar_lea.vmem %s1879_s26, %s1633_s15 }
  0x86   : > { %v1338_v0 = vmov 0.0  }
  0x87   : > { %387 = vst [vmem:[#allocation2] sm:$0xff] %v1338_v0 }
  0x88 PF: > { %v404_v1 = vld [vmem:[%s1620_s19 + $0x78] sm:$0xff]  ;;  %v1339_v2 = vmov 0.0   ;;  %v403_v3 = vld [vmem:[%s1620_s19 + $0x70] sm:$0xff]  ;;  %vm1340_vm0 = vmmov 0   ;;  %v402_v4 = vld [vmem:[%s1620_s19 + $0x68] sm:$0xff]  ;;  %s1881_s0 = sld [smem:[#allocation20_spill]] }
  0x89   : > { %851 = vmatprep.subr.mxu0 %v1339_v2  ;;  %883 = vmatprep.mubr.msk.f32.mxu0 %vm1340_vm0, %v1339_v2  ;;  %v401_v5 = vld [vmem:[%s1620_s19 + $0x60] sm:$0xff]  ;;  %v500_v6 = vld [vmem:[%s1639_s21 + $0x78] sm:$0xff]  ;;  %v499_v7 = vld [vmem:[%s1639_s21 + $0x70] sm:$0xff] }
  0x8a   : > { %852 = vmatpush3.msra.mxu0 %v404_v1  ;;  %886 = vmatprep.subr.mxu1 %v1339_v2  ;;  %v400_v8 = vld [vmem:[%s1620_s19 + $0x58] sm:$0xff]  ;;  %v498_v9 = vld [vmem:[%s1639_s21 + $0x68] sm:$0xff]  ;;  %v399_v10 = vld [vmem:[%s1620_s19 + $0x50] sm:$0xff] }
  0x8b   : > { %853 = vmatprep.subr.mxu0 %v1339_v2  ;;  %918 = vmatprep.mubr.msk.f32.mxu1 %vm1340_vm0, %v1339_v2  ;;  %v497_v11 = vld [vmem:[%s1639_s21 + $0x60] sm:$0xff]  ;;  %v398_v12 = vld [vmem:[%s1620_s19 + $0x48] sm:$0xff]  ;;  %v496_v13 = vld [vmem:[%s1639_s21 + $0x58] sm:$0xff] }
  0x8c   : > { %854 = vmatpush3.msra.mxu0 %v403_v3  ;;  %887 = vmatpush3.msra.mxu1 %v500_v6  ;;  %v397_v14 = vld [vmem:[%s1620_s19 + $0x40] sm:$0xff]  ;;  %v495_v15 = vld [vmem:[%s1639_s21 + $0x50] sm:$0xff]  ;;  %v396_v16 = vld [vmem:[%s1620_s19 + $0x38] sm:$0xff] }
  0x8d   : > { %855 = vmatprep.subr.mxu0 %v1339_v2  ;;  %888 = vmatprep.subr.mxu1 %v1339_v2  ;;  %v494_v17 = vld [vmem:[%s1639_s21 + $0x48] sm:$0xff]  ;;  %v395_v18 = vld [vmem:[%s1620_s19 + $0x30] sm:$0xff]  ;;  %v493_v19 = vld [vmem:[%s1639_s21 + $0x40] sm:$0xff] }
  0x8e   : > { %856 = vmatpush3.msra.mxu0 %v402_v4  ;;  %889 = vmatpush3.msra.mxu1 %v499_v7  ;;  %v394_v20 = vld [vmem:[%s1620_s19 + $0x28] sm:$0xff]  ;;  %v492_v21 = vld [vmem:[%s1639_s21 + $0x38] sm:$0xff]  ;;  %v393_v22 = vld [vmem:[%s1620_s19 + $0x20] sm:$0xff]  ;;  %p807_p3 = scmp.ne.s32.totalorder %s1881_s0, 1 }
  0x8f   : > { %857 = vmatprep.subr.mxu0 %v1339_v2  ;;  %890 = vmatprep.subr.mxu1 %v1339_v2  ;;  %v491_v23 = vld [vmem:[%s1639_s21 + $0x30] sm:$0xff]  ;;  %v392_v24 = vld [vmem:[%s1620_s19 + $0x18] sm:$0xff]  ;;  %v490_v25 = vld [vmem:[%s1639_s21 + $0x28] sm:$0xff]  ;;  %s1882_s14 = sld [smem:[#allocation32_spill]] (!%p807_p3) }
  0x90   : > { %858 = vmatpush3.msra.mxu0 %v401_v5  ;;  %891 = vmatpush3.msra.mxu1 %v498_v9  ;;  %v391_v26 = vld [vmem:[%s1620_s19 + $0x10] sm:$0xff]  ;;  %v489_v27 = vld [vmem:[%s1639_s21 + $0x20] sm:$0xff]  ;;  %v390_v28 = vld [vmem:[%s1620_s19 + $0x8] sm:$0xff] }
  0x91   : > { %859 = vmatprep.subr.mxu0 %v1339_v2  ;;  %892 = vmatprep.subr.mxu1 %v1339_v2  ;;  %v488_v29 = vld [vmem:[%s1639_s21 + $0x18] sm:$0xff]  ;;  %v389_v30 = vld [vmem:[%s1620_s19] sm:$0xff]  ;;  %v487_v32 = vld [vmem:[%s1639_s21 + $0x10] sm:$0xff] }
  0x92   : > { %860 = vmatpush3.msra.mxu0 %v400_v8  ;;  %893 = vmatpush3.msra.mxu1 %v497_v11  ;;  %v388_v31 = vld [vmem:[%s1612_s2] sm:$0xff]  ;;  %v486_v33 = vld [vmem:[%s1639_s21 + $0x8] sm:$0xff]  ;;  %v485_v34 = vld [vmem:[%s1639_s21] sm:$0xff] }
  0x93   : > { %861 = vmatprep.subr.mxu0 %v1339_v2  ;;  %894 = vmatprep.subr.mxu1 %v1339_v2  ;;  %v806_v35 = vld [vmem:[%s381_s5] ss:$0 sm:$0xff] }
  0x94   : > { %862 = vmatpush3.msra.mxu0 %v399_v10  ;;  %895 = vmatpush3.msra.mxu1 %v496_v13  ;;  %v484_v40 = vld [vmem:[#allocation2] sm:$0xff] }
  0x95   : > { %863 = vmatprep.subr.mxu0 %v1339_v2  ;;  %896 = vmatprep.subr.mxu1 %v1339_v2 }
  0x96   : > { %864 = vmatpush3.msra.mxu0 %v398_v12  ;;  %897 = vmatpush3.msra.mxu1 %v495_v15 }
  0x97   : > { %865 = vmatprep.subr.mxu0 %v1339_v2  ;;  %898 = vmatprep.subr.mxu1 %v1339_v2 }
  0x98   : > { %866 = vmatpush3.msra.mxu0 %v397_v14  ;;  %899 = vmatpush3.msra.mxu1 %v494_v17 }
  0x99   : > { %867 = vmatprep.subr.mxu0 %v1339_v2  ;;  %900 = vmatprep.subr.mxu1 %v1339_v2 }
  0x9a   : > { %868 = vmatpush3.msra.mxu0 %v396_v16  ;;  %901 = vmatpush3.msra.mxu1 %v493_v19 }
  0x9b   : > { %869 = vmatprep.subr.mxu0 %v1339_v2  ;;  %902 = vmatprep.subr.mxu1 %v1339_v2 }
  0x9c   : > { %870 = vmatpush3.msra.mxu0 %v395_v18  ;;  %903 = vmatpush3.msra.mxu1 %v492_v21 }
  0x9d   : > { %871 = vmatprep.subr.mxu0 %v1339_v2  ;;  %904 = vmatprep.subr.mxu1 %v1339_v2 }
  0x9e   : > { %872 = vmatpush3.msra.mxu0 %v394_v20  ;;  %905 = vmatpush3.msra.mxu1 %v491_v23 }
  0x9f   : > { %873 = vmatprep.subr.mxu0 %v1339_v2  ;;  %906 = vmatprep.subr.mxu1 %v1339_v2 }
  0xa0   : > { %874 = vmatpush3.msra.mxu0 %v393_v22  ;;  %907 = vmatpush3.msra.mxu1 %v490_v25 }
  0xa1   : > { %875 = vmatprep.subr.mxu0 %v1339_v2  ;;  %908 = vmatprep.subr.mxu1 %v1339_v2 }
  0xa2   : > { %876 = vmatpush3.msra.mxu0 %v392_v24  ;;  %909 = vmatpush3.msra.mxu1 %v489_v27 }
  0xa3   : > { %877 = vmatprep.subr.mxu0 %v1339_v2  ;;  %910 = vmatprep.subr.mxu1 %v1339_v2 }
  0xa4   : > { %878 = vmatpush3.msra.mxu0 %v391_v26  ;;  %911 = vmatpush3.msra.mxu1 %v488_v29 }
  0xa5   : > { %879 = vmatprep.subr.mxu0 %v1339_v2  ;;  %912 = vmatprep.subr.mxu1 %v1339_v2 }
  0xa6   : > { %880 = vmatpush3.msra.mxu0 %v390_v28  ;;  %913 = vmatpush3.msra.mxu1 %v487_v32 }
  0xa7   : > { %881 = vmatprep.subr.mxu0 %v1339_v2  ;;  %914 = vmatprep.subr.mxu1 %v1339_v2 }
  0xa8   : > { %882 = vmatpush3.msra.mxu0 %v389_v30  ;;  %915 = vmatpush3.msra.mxu1 %v486_v33 }
  0xa9   : > { %884 = vmatmul.mubr.f32.vlgmr.msra.gmra.mxu0 %v388_v31  ;;  %916 = vmatprep.subr.mxu1 %v1339_v2 }
  0xaa   : > { %917 = vmatpush3.msra.mxu1 %v485_v34 }
 0x169   : > { %v478_v36 = vpop.f32.mrf.mxu0 }
 0x16a   : > { %v479_v37 = vadd.f32 %v806_v35, %v478_v36 }
 0x16b   : > { %v885_v38 = vpop.f32.mrf.mxu0 }
 0x16c   : > { %v482_v39 = vmax.f32 %v479_v37, 0.0 }
 0x16e   : > { %483 = vst [vmem:[%s378_s23] sm:$0xff] %v482_v39  ;;  %919 = vmatmul.mubr.f32.vlgmr.msra.gmra.mxu1 %v482_v39 }
 0x22d   : > { %576 = sbr.rel (%p807_p3) target bundleno = 572 (0x23c), region = 60 }
 0x22e   : > { %v567_v41 = vpop.f32.mrf.mxu1 }
 0x22f   : > { %v571_v42 = vadd.f32 %v567_v41, %v484_v40 }
 0x230   : > { %v920_v43 = vpop.f32.mrf.mxu1 }
 0x231   : > { %572 = vst [vmem:[#allocation2] sm:$0xff] %v571_v42 }
 0x232   : > { %v808_v45 = vld [vmem:[%s1882_s14] ss:$0 sm:$0xff] }
 0x238   : > { %v577_v44 = vld [vmem:[#allocation2] sm:$0xff] }
 0x239   : > { %v585_v46 = vadd.f32 %v808_v45, %v577_v44 }
 0x23b   : > { %586 = vst [vmem:[%s1641_s7] sm:$0xff] %v585_v46 }
 0x23c PF: > { %s1883_s25 = sld [smem:[#allocation21_spill]]  ;;  %s606_s26 = sshll.u32 %s1641_s7, 4  ;;  %s607_s26 = int_to_ptr.vmem [resolvable:$true] %s606_s26 }
 0x23d   : > { %s1884_s4 = sld [smem:[#allocation33_spill]]  ;;  %s588_s5 = scalar_lea.sflag [#allocation5], %s1608_s13 }
 0x23e   : > { %s1152_s21 = scalar_lea.vmem %s607_s26, 128  ;;  %p1885_p9 = scmp.ne.s32.totalorder %s1865_s30, 0 }
 0x23f   : > { %p1153_p12 = scmp.ne.s32.totalorder %s607_s26, %s1152_s21  ;;  %s1341_s12 = smov [#allocation9]  }
 0x240   : > { %s1156_s24 = sshll.u32 %s1341_s12, 4  ;;  %s1157_s24 = int_to_ptr.vmem [resolvable:$false] %s1156_s24 }
 0x241   : > { %p1154_p2 = pnand %p1153_p12, %p1885_p9  ;;  %s1158_s2 = scalar_lea.vmem %s1157_s24, 256 }
 0x242   : > { %s811_s19 = sshll.u32 %s1883_s25, 7  ;;  %p1159_p0 = scmp.lt.s32.totalorder %s607_s26, %s1157_s24 }
 0x243   : > { %s604_s9 = scalar_lea.hbm %s1884_s4, %s811_s19  ;;  %p1155_p1 = pneg %p1154_p2 }
 0x244   : > { %p1160_p11 = scmp.lt.s32.totalorder %s1158_s2, %s1152_s21 }
 0x246   : > { %p1161_p10 = por %p1160_p11, %p1159_p0 }
 0x248   : > { %p1162_p7 = pnand %p1161_p10, %p1155_p1 }
 0x24a   : > { %1165 = shalt.err (!%p1162_p7)
}
 0x24b   : > { %s1166_s0 = scalar_lea.hbm %s604_s9, 128  ;;  %s1170_s6 = scalar_lea.hbm %s1884_s4, 256 }
 0x24c   : > { %p1167_p13 = scmp.ne.s32.totalorder %s604_s9, %s1166_s0  ;;  %p1171_p6 = scmp.lt.s32.totalorder %s604_s9, %s1884_s4 }
 0x24d   : > { %p1172_p3 = scmp.lt.s32.totalorder %s1170_s6, %s1166_s0 }
 0x24e   : > { %p1168_p5 = pnand %p1167_p13, %p1885_p9 }
 0x24f   : > { %p1173_p12 = por %p1172_p3, %p1171_p6 }
 0x250   : > { %p1169_p4 = pneg %p1168_p5 }
 0x252   : > { %p1174_p2 = pnand %p1173_p12, %p1169_p4 }
 0x254   : > { %1177 = shalt.err (!%p1174_p2)
}
 0x255   : > { %s1886_s19 = sld [smem:[#allocation20_spill]]  ;;  %s812_s1 = sshll.u32 %s1883_s25, 1 }
 0x256   : > { %927 = dma.vmem_to_hbm [thread:$0]  (%p1885_p9), %s607_s26, 128, %s604_s9, %s588_s5  }
 0x257   : > { %s621_s15 = sshll.u32 %s378_s23, 4  ;;  %s1887_s0 = sld [smem:[#allocation34_spill]]  ;;  %s622_s15 = int_to_ptr.vmem [resolvable:$true] %s621_s15 }
 0x258   : > { %s593_s7 = scalar_lea.sflag [#allocation11], %s376_s11  ;;  %s1178_s6 = scalar_lea.vmem %s622_s15, 128 }
 0x259   : > { %p1179_p1 = scmp.ne.s32.totalorder %s622_s15, %s1178_s6  ;;  %s1342_s30 = smov [#allocation10]  }
 0x25a   : > { %s1182_s20 = sshll.u32 %s1342_s30, 4  ;;  %s1183_s20 = int_to_ptr.vmem [resolvable:$false] %s1182_s20 }
 0x25b   : > { %s617_s21 = sadd.s32 %s1886_s19, %s812_s1  ;;  %p1180_p0 = pnand %p1179_p1, %p1566_p8 }
 0x25c   : > { %s813_s12 = sshll.u32 %s617_s21, 7  ;;  %s1184_s25 = scalar_lea.vmem %s1183_s20, 256 }
 0x25d   : > { %s619_s13 = scalar_lea.hbm %s1887_s0, %s813_s12  ;;  %p1181_p11 = pneg %p1180_p0 }
 0x25e   : > { %p1185_p9 = scmp.lt.s32.totalorder %s622_s15, %s1183_s20  ;;  %p1186_p10 = scmp.lt.s32.totalorder %s1184_s25, %s1178_s6 }
 0x260   : > { %p1187_p7 = por %p1186_p10, %p1185_p9 }
 0x262   : > { %p1188_p13 = pnand %p1187_p7, %p1181_p11 }
 0x264   : > { %1191 = shalt.err (!%p1188_p13)
}
 0x265   : > { %s1192_s18 = scalar_lea.hbm %s619_s13, 128  ;;  %s1196_s9 = scalar_lea.hbm %s1887_s0, 512 }
 0x266   : > { %p1193_p5 = scmp.ne.s32.totalorder %s619_s13, %s1192_s18  ;;  %p1197_p3 = scmp.lt.s32.totalorder %s619_s13, %s1887_s0 }
 0x267   : > { %p1198_p12 = scmp.lt.s32.totalorder %s1196_s9, %s1192_s18 }
 0x268   : > { %p1194_p4 = pnand %p1193_p5, %p1566_p8 }
 0x269   : > { %p1199_p2 = por %p1198_p12, %p1197_p3 }
 0x26a   : > { %p1195_p6 = pneg %p1194_p4 }
 0x26c   : > { %p1200_p1 = pnand %p1199_p2, %p1195_p6 }
 0x26e   : > { %1203 = shalt.err (!%p1200_p1)
}
 0x26f   : > { %928 = dma.vmem_to_hbm [thread:$0]  (%p1566_p8), %s622_s15, 128, %s619_s13, %s593_s7  }
 0x270 PF: > { %s1888_s14 = sld [smem:[#allocation27_spill]]  ;;  %p949_p0 = scmp.ge.s32.totalorder %s1330_s10, 2 }
 0x271   : > { %s633_s19 = sand.u32 1, %s1302_s27  }
 0x272   : > { %s634_s1 = scalar_lea.sflag [#allocation5], %s633_s19 }
 0x276   : > { %p1889_p11 = scmp.ne.s32.totalorder %s1888_s14, 0 }
 0x278   : > { %p942_p9 = pnand %p949_p0, %p1889_p11 }
 0x27a   : > { %p943_p10 = pneg %p942_p9 }
 0x27c   : > { %1269 = dma.done.wait (%p943_p10), %s634_s1, 128  }
 0x27d   : > { %1271 = vsyncadd (%p943_p10), %s634_s1, 4294967168  ;;  %s1890_s21 = sld [smem:[#allocation16_spill]]  ;;  %p1891_p7 = scmp.ne.s32.totalorder %s1870_s16, 0 }
 0x27f   : > { %p945_p13 = pnand %p949_p0, %p1891_p7 }
 0x281   : > { %p946_p5 = pneg %p945_p13 }
 0x283   : > { %s642_s12 = sand.u32 1, %s1890_s21  }
 0x284   : > { %s643_s17 = scalar_lea.sflag [#allocation11], %s642_s12 }
 0x285   : > { %1273 = dma.done.wait (%p946_p5), %s643_s17, 128  }
 0x286   : > { %1275 = vsyncadd (%p946_p5), %s643_s17, 4294967168  ;;  %s29_s10 = sadd.s32 1, %s1330_s10   ;;  %s1893_s27 = sld [smem:[#allocation17_spill]] }
 0x287   : > { %p1771_p8 = scmp.ge.s32.totalorder %s29_s10, 6   ;;  %s1894_s23 = sld [smem:[#allocation28_spill]] }
 0x288   : > { %s1895_s24 = sld [smem:[#allocation18_spill]]  ;;  %s1902_s21 = smov %s1282_s22 }
 0x289   : > { %s1896_s25 = sld [smem:[#allocation19_spill]]  ;;  %s1907_s30 = smov %s1322_s8 }
 0x28a   : > { %s1897_s26 = sld [smem:[#allocation25_spill]] }
 0x28b   : > { %s1898_s16 = sld [smem:[#allocation26_spill]] }
 0x28c   : > { %s1899_s7 = sld [smem:[#allocation22_spill]]  ;;  %s1903_s22 = smov %s1893_s27 }
 0x28d   : > { %s1900_s2 = sld [smem:[#allocation23_spill]]  ;;  %s1904_s27 = smov %s1306_s28 }
 0x28e   : > { %s1901_s9 = sld [smem:[#allocation24_spill]]  ;;  %s1905_s28 = smov %s1310_s29 }
 0x28f   :  { %28 = sbr.rel (!%p1771_p8) target bundleno = 21 (0x15), region = 137 }
 0x291   : > { %s1906_s29 = smov %s1898_s16 }
 0x293   : > { %s1908_s8 = smov %s1900_s2 }
 0x294   :  { %648 = vsyncpa [#allocation4], 1 }
 0x295   :  { %650 = vsyncpa [#allocation4 + $0x1], 1 }
 0x296   :  { %651 = vsyncpa [#allocation7], 1 }
 0x297   :  { %653 = vsyncpa [#allocation7 + $0x1], 1 }
 0x298   :  { %654 = vsyncpa [#allocation5], 1 }
 0x299   :  { %656 = vsyncpa [#allocation5 + $0x1], 1 }
 0x29a   :  { %657 = vsyncpa [#allocation11], 1 }
 0x29b   :  { %659 = vsyncpa [#allocation11 + $0x1], 1 }

</bundles_post_ra>
